<compile_context>
chip_gen: v5e
topology: v5e:2x2
jax: 0.10.0
libtpu: 0.0.40
codegen_flags: <defaults>
</compile_context>

<pallas_src>
import functools

import jax
import jax.numpy as jnp
from jax.experimental import pallas as pl
from jax.experimental.pallas import tpu as pltpu


def _round_up(x, m):
    return ((x + m - 1) // m) * m


def _fit_tile(req, n_pad):
    """Largest multiple of 256 <= req that divides n_pad (n_pad % 256 == 0)."""
    t = max(256, min((req // 256) * 256, n_pad))
    while t > 256 and n_pad % t != 0:
        t -= 256
    return t


# ---------------------------------------------------------------------------
# Kernel 1: feature projection  F = (X * norm_src) @ W
# ---------------------------------------------------------------------------
def _project_kernel(x_ref, norm_ref, w_ref, f_ref):
    feat = x_ref[...] * norm_ref[...]                         # src-side norm
    f_ref[...] = jnp.dot(feat, w_ref[...],
                         preferred_element_type=jnp.float32)


def _project(x, norm, w, *, tile_m):
    n_pad, in_feats = x.shape
    out_pad = w.shape[1]
    return pl.pallas_call(
        _project_kernel,
        out_shape=jax.ShapeDtypeStruct((n_pad, out_pad), jnp.float32),
        grid_spec=pltpu.PrefetchScalarGridSpec(
            num_scalar_prefetch=0,
            grid=(n_pad // tile_m,),
            in_specs=[
                pl.BlockSpec((tile_m, in_feats), lambda i: (i, 0)),   # X rows
                pl.BlockSpec((tile_m, 1), lambda i: (i, 0)),          # norm_src
                pl.BlockSpec((in_feats, out_pad), lambda i: (0, 0)),  # W resident
            ],
            out_specs=pl.BlockSpec((tile_m, out_pad), lambda i: (i, 0)),
        ),
        compiler_params=pltpu.CompilerParams(
            dimension_semantics=("parallel",)),
    )(x, norm, w)


# ---------------------------------------------------------------------------
# Kernel 2: aggregation  out = (A @ F) * norm_dst + bias
#   grid = (dst-row tiles, src/K tiles); out_ref is the f32 accumulator
#   (its block index is constant across K, so it stays VMEM-resident).
# ---------------------------------------------------------------------------
def _aggregate_kernel(a_ref, f_ref, norm_ref, bias_ref, out_ref, *,
                      tile_k, f_resident):
    k = pl.program_id(1)

    @pl.when(k == 0)
    def _():
        out_ref[...] = jnp.zeros_like(out_ref)

    if f_resident:
        # F is the full (n_src_pad, out_pad) array resident in VMEM; take the
        # K-th row block for this step.
        off = pl.multiple_of(k * tile_k, tile_k)
        f_blk = f_ref[pl.ds(off, tile_k), :]
    else:
        f_blk = f_ref[...]

    # A is stored as bf16 (exact 0/1); upcast after DMA so the math is exact.
    out_ref[...] += jnp.dot(a_ref[...].astype(jnp.float32), f_blk,
                            preferred_element_type=jnp.float32)

    @pl.when(k == pl.num_programs(1) - 1)
    def _():
        out_ref[...] = out_ref[...] * norm_ref[...] + bias_ref[...]


def _aggregate(a, f, norm, bias, *, tile_m, tile_k, f_resident,
               vmem_limit_bytes):
    n_dst_pad, n_src_pad = a.shape
    out_pad = f.shape[1]

    if f_resident:
        # Constant block index -> DMA'd once, reused across all (i, k) steps.
        f_spec = pl.BlockSpec((n_src_pad, out_pad), lambda i, k: (0, 0))
    else:
        f_spec = pl.BlockSpec((tile_k, out_pad), lambda i, k: (k, 0))

    kernel = functools.partial(_aggregate_kernel, tile_k=tile_k,
                               f_resident=f_resident)
    return pl.pallas_call(
        kernel,
        out_shape=jax.ShapeDtypeStruct((n_dst_pad, out_pad), jnp.float32),
        grid_spec=pltpu.PrefetchScalarGridSpec(
            num_scalar_prefetch=0,
            grid=(n_dst_pad // tile_m, n_src_pad // tile_k),
            in_specs=[
                pl.BlockSpec((tile_m, tile_k), lambda i, k: (i, k)),  # A (bf16)
                f_spec,                                               # F (f32)
                pl.BlockSpec((tile_m, 1), lambda i, k: (i, 0)),       # norm_dst
                pl.BlockSpec((1, out_pad), lambda i, k: (0, 0)),      # bias
            ],
            out_specs=pl.BlockSpec((tile_m, out_pad), lambda i, k: (i, 0)),
        ),
        compiler_params=pltpu.CompilerParams(
            dimension_semantics=("parallel", "arbitrary"),
            vmem_limit_bytes=vmem_limit_bytes),
    )(a, f, norm, bias)


# ---------------------------------------------------------------------------
# GraphConvsg.forward wrapper
# ---------------------------------------------------------------------------
def graph_conv_sg(adj, feat, weight, bias=None, *, norm=True,
                  activation=None, tile_m=512, tile_k=512):
    """adj: dense (N, N) 0/1 adjacency with adj[dst, src] = 1 iff edge src->dst."""
    n, in_feats = feat.shape
    out_feats = weight.shape[1]
    assert adj.shape == (n, n)

    n_pad = _round_up(n, 256)
    tile_m = _fit_tile(tile_m, n_pad)       # always divides n_pad
    tile_k = _fit_tile(tile_k, n_pad)
    out_pad = _round_up(out_feats, 128)     # lane-dense output / F
    pad_n = n_pad - n

    if norm:
        deg = jnp.sum(adj.astype(jnp.float32), axis=1)            # in-degrees
        norm_vec = jnp.power(jnp.maximum(deg, 1.0), -0.5)         # clamp(1)^-0.5
    else:
        norm_vec = jnp.ones((n,), jnp.float32)

    # A: cast to bf16 (0/1 is exact) fused with the pad -> the materialized
    # padded copy is half the size of an f32 pad, and the kernel streams bf16.
    a_p = jnp.pad(adj.astype(jnp.bfloat16), ((0, pad_n), (0, pad_n)))
    # X keeps its native feature width (no contraction-dim padding).
    x_p = jnp.pad(feat.astype(jnp.float32), ((0, pad_n), (0, 0)))
    norm_p = jnp.pad(norm_vec.astype(jnp.float32)[:, None], ((0, pad_n), (0, 0)))
    w_p = jnp.pad(weight.astype(jnp.float32), ((0, 0), (0, out_pad - out_feats)))
    b = jnp.zeros((out_feats,), jnp.float32) if bias is None else bias
    b_p = jnp.pad(b.astype(jnp.float32), (0, out_pad - out_feats))[None, :]

    # Projection row tile: grow while it still divides n_pad and the working
    # set stays small (W is resident per step, so bigger tiles = fewer steps).
    proj_tile = tile_m
    while (proj_tile * 2 <= n_pad and n_pad % (proj_tile * 2) == 0
           and 2 * (proj_tile * 2) * (in_feats + out_pad) * 4 <= (8 << 20)):
        proj_tile *= 2

    f = _project(x_p, norm_p, w_p, tile_m=proj_tile)

    # Keep F VMEM-resident during aggregation whenever it comfortably fits
    # (budget 2x for buffering); otherwise fall back to K-tiled streaming.
    f_bytes = n_pad * out_pad * 4
    f_resident = (2 * f_bytes) <= (12 << 20)

    # VMEM budget: double-buffered A (bf16) + F + norm + bias + resident out.
    vmem_need = (2 * tile_m * tile_k * 2
                 + 2 * (f_bytes if f_resident else tile_k * out_pad * 4)
                 + 2 * tile_m * 4
                 + 2 * out_pad * 4
                 + 2 * tile_m * out_pad * 4)
    # Generous headroom, but capped below v7x's 64 MiB physical VMEM.
    vmem_limit = int(min(max(2 * vmem_need, 32 << 20), 56 << 20))

    out_p = _aggregate(a_p, f, norm_p, b_p, tile_m=tile_m, tile_k=tile_k,
                       f_resident=f_resident, vmem_limit_bytes=vmem_limit)

    out = out_p[:n, :out_feats]
    if activation is not None:              # default activation=None
        out = activation(out)
    return out
    # TODO(synk): weighted=True path (fn.u_mul_e with per-edge weights) is not
    # implemented; default constructor arg is weighted=False.
    # TODO(synk): for genuinely sparse graphs, a block-skip path via
    # PrefetchScalarGridSpec (skip all-zero A tiles) would beat the dense wall.


if __name__ == "__main__":
    key = jax.random.PRNGKey(0)
    n = 300                     # nodes (padded to 512 inside the wrapper)
    in_feats = 32
    out_feats = 32

    k_adj, k_feat, k_w, k_b = jax.random.split(key, 4)
    adj = (jax.random.uniform(k_adj, (n, n)) < 0.05).astype(jnp.float32)
    feat = jax.random.normal(k_feat, (n, in_feats), jnp.float32)

    bound = (6.0 / (in_feats + out_feats)) ** 0.5            # xavier_uniform_
    weight = jax.random.uniform(k_w, (in_feats, out_feats), jnp.float32,
                                -bound, bound)
    # reset_parameters() zeroes the bias; use a non-zero one to exercise the add.
    bias = 0.1 * jax.random.normal(k_b, (out_feats,), jnp.float32)

    out = graph_conv_sg(adj, feat, weight, bias)
    out = jax.block_until_ready(out)

    # Dense reference (in_feats <= out_feats branch: aggregate then matmul).
    deg = jnp.sum(adj, axis=1)
    nrm = jnp.power(jnp.maximum(deg, 1.0), -0.5)[:, None]
    h = feat * nrm
    rst = (adj @ h) @ weight
    ref = rst * nrm + bias

    assert out.shape == (n, out_feats)
    err = float(jnp.max(jnp.abs(out - ref)))
    assert jnp.allclose(out, ref, atol=1e-4, rtol=1e-4), err
    print("KERNEL_OK")
</pallas_src>

<mosaic_0001>
module attributes {stable_mosaic.version = 11 : i64} {
  func.func @_project_kernel(%arg0: i32, %arg1: memref<512x32xf32, #tpu.memory_space<vmem>>, %arg2: memref<512x1xf32, #tpu.memory_space<vmem>>, %arg3: memref<32x128xf32, #tpu.memory_space<vmem>>, %arg4: memref<512x128xf32, #tpu.memory_space<vmem>>) attributes {dimension_semantics = [#tpu.dimension_semantics<parallel>], iteration_bounds = array<i64: 1>, scalar_prefetch = 0 : i64, scratch_operands = 0 : i64, tpu.core_type = #tpu.core_type<tc>, window_params = [{transform_indices = @transform_0, window_bounds = array<i64: 512, 32>}, {transform_indices = @transform_1, window_bounds = array<i64: 512, 1>}, {pipeline_mode = #tpu.pipeline_mode<synchronous>, transform_indices = @transform_2, window_bounds = array<i64: 32, 128>}, {transform_indices = @transform_3, window_bounds = array<i64: 512, 128>}]} {
    %c0 = arith.constant 0 : index
    %c0_0 = arith.constant 0 : index
    %0 = vector.load %arg1[%c0, %c0_0] : memref<512x32xf32, #tpu.memory_space<vmem>>, vector<512x32xf32>
    %c0_1 = arith.constant 0 : index
    %c0_2 = arith.constant 0 : index
    %1 = vector.load %arg2[%c0_1, %c0_2] : memref<512x1xf32, #tpu.memory_space<vmem>>, vector<512x1xf32>
    %2 = vector.broadcast %1 : vector<512x1xf32> to vector<512x32xf32>
    %3 = arith.mulf %0, %2 : vector<512x32xf32>
    %c0_3 = arith.constant 0 : index
    %c0_4 = arith.constant 0 : index
    %4 = vector.load %arg3[%c0_3, %c0_4] : memref<32x128xf32, #tpu.memory_space<vmem>>, vector<32x128xf32>
    %cst = arith.constant dense<0.000000e+00> : vector<512x128xf32>
    %5 = tpu.matmul %3, %4, %cst {dimension_numbers = #tpu.dot_dimension_numbers<[1], [0], [0], [1], [0, 0, 1, 1], [], []>} : vector<512x32xf32>, vector<32x128xf32>, vector<512x128xf32> -> vector<512x128xf32>
    %c0_5 = arith.constant 0 : index
    %c0_6 = arith.constant 0 : index
    %6 = vector.load %arg4[%c0_5, %c0_6] : memref<512x128xf32, #tpu.memory_space<vmem>>, vector<512x128xf32>
    tpu.vector_store %arg4[%c0_5, %c0_6], %5 {strides = array<i32>} : memref<512x128xf32, #tpu.memory_space<vmem>>, vector<512x128xf32>,
    return
  }
  func.func @transform_0(%arg0: i32) -> (i32, i32) {
    %c0_i32 = arith.constant 0 : i32
    %c0_i32_0 = arith.constant 0 : i32
    return %arg0, %c0_i32 : i32, i32
  }
  func.func @transform_1(%arg0: i32) -> (i32, i32) {
    %c0_i32 = arith.constant 0 : i32
    %c0_i32_0 = arith.constant 0 : i32
    return %arg0, %c0_i32 : i32, i32
  }
  func.func @transform_2(%arg0: i32) -> (i32, i32) {
    %c0_i32 = arith.constant 0 : i32
    %c0_i32_0 = arith.constant 0 : i32
    %c0_i32_1 = arith.constant 0 : i32
    return %c0_i32, %c0_i32_0 : i32, i32
  }
  func.func @transform_3(%arg0: i32) -> (i32, i32) {
    %c0_i32 = arith.constant 0 : i32
    %c0_i32_0 = arith.constant 0 : i32
    return %arg0, %c0_i32 : i32, i32
  }
}

</mosaic_0001>

<bundles_post_ra>
// kernel: tpu_custom_call.1
= control target key start
LH: loop header
LB: loop body
LE: loop exit
PB: predicated region body
PF: predicated region fallthrough
CT: control target
= control target key end

     0   :  { %v1124_v3 = vmov 0   ;;  %s1644_s0 = inlined_call_operand.vmem [shape: f32[512,32], index: 0, kind: input, shape index: {}]   ;;  %s1645_s1 = inlined_call_operand.vmem [shape: f32[512,1], index: 1, kind: input, shape index: {}]   ;;  %s1646_s2 = inlined_call_operand.vmem [shape: f32[32,128], index: 2, kind: input, shape index: {}]   ;;  %s1647_s3 = inlined_call_operand.hbm [shape: f32[512,128], index: 3, kind: output, shape index: {}]  }
   0x1   :  { %v83_v0 = vld [vmem:[%s1645_s1 + $0x20] sm:$0xff]  ;;  %v81_v1 = vld [vmem:[%s1645_s1 + $0x10] sm:$0xff]  ;;  %1097 = vset.pattern.permute.xlu2 %v1124_v3  ;;  %1096 = vset.pattern.permute.xlu1 %v1124_v3 }
   0x2   :  { %v79_v2 = vld [vmem:[%s1645_s1] sm:$0xff]  ;;  %1095 = vset.pattern.permute.xlu0 %v1124_v3  ;;  %165 = vperm.xlu2 %1097, %v83_v0  }
   0x3   :  { %155 = vperm.xlu1 %1096, %v81_v1   ;;  %145 = vperm.xlu0 %1095, %v79_v2  }
   0x4   :  { %8 = vsyncpa [#allocation3], 0  ;;  %v84_v4 = vld [vmem:[%s1645_s1 + $0x28] sm:$0xff]  ;;  %v82_v5 = vld [vmem:[%s1645_s1 + $0x18] sm:$0xff]  ;;  %vm531_vm0 = vcmask 261120   ;;  %s1003_s25 = sshll.u32 %s1647_s3, 4  ;;  %s1004_s25 = int_to_ptr.hbm [resolvable:$true] %s1003_s25 }
   0x5   :  { %v80_v6 = vld [vmem:[%s1645_s1 + $0x8] sm:$0xff]  ;;  %v87_v7 = vld [vmem:[%s1645_s1 + $0x40] sm:$0xff]  ;;  %v86_v8 = vld [vmem:[%s1645_s1 + $0x38] sm:$0xff]  ;;  %s1126_s26 = smov 128   ;;  %s1127_s27 = smov 8  }
   0x6   :  { %v85_v9 = vld [vmem:[%s1645_s1 + $0x30] sm:$0xff]  ;;  %v90_v10 = vld [vmem:[%s1645_s1 + $0x58] sm:$0xff]  ;;  %v88_v12 = vld [vmem:[%s1645_s1 + $0x48] sm:$0xff] }
   0x7   :  { %v89_v11 = vld [vmem:[%s1645_s1 + $0x50] sm:$0xff]  ;;  %v92_v14 = vld [vmem:[%s1645_s1 + $0x68] sm:$0xff]  ;;  %v91_v15 = vld [vmem:[%s1645_s1 + $0x60] sm:$0xff] }
   0x8   :  { %v93_v13 = vld [vmem:[%s1645_s1 + $0x70] sm:$0xff]  ;;  %v95_v16 = vld [vmem:[%s1645_s1 + $0x80] sm:$0xff]  ;;  %v96_v19 = vld [vmem:[%s1645_s1 + $0x88] sm:$0xff] }
   0x9   :  { %v127_v17 = vld [vmem:[%s1645_s1 + $0x180] sm:$0xff]  ;;  %v128_v20 = vld [vmem:[%s1645_s1 + $0x188] sm:$0xff]  ;;  %v97_v22 = vld [vmem:[%s1645_s1 + $0x90] sm:$0xff] }
   0xa   :  { %170 = vperm.xlu2 %1097, %v84_v4   ;;  %v111_v18 = vld [vmem:[%s1645_s1 + $0x100] sm:$0xff]  ;;  %v112_v21 = vld [vmem:[%s1645_s1 + $0x108] sm:$0xff]  ;;  %v129_v23 = vld [vmem:[%s1645_s1 + $0x190] sm:$0xff] }
   0xb   :  { %160 = vperm.xlu1 %1096, %v82_v5   ;;  %150 = vperm.xlu0 %1095, %v80_v6   ;;  %v113_v24 = vld [vmem:[%s1645_s1 + $0x110] sm:$0xff]  ;;  %v98_v25 = vld [vmem:[%s1645_s1 + $0x98] sm:$0xff]  ;;  %v99_v28 = vld [vmem:[%s1645_s1 + $0xa0] sm:$0xff] }
   0xc   :  { %v130_v26 = vld [vmem:[%s1645_s1 + $0x198] sm:$0xff]  ;;  %v131_v29 = vld [vmem:[%s1645_s1 + $0x1a0] sm:$0xff]  ;;  %v529_v32 = vld [vmem:[%s1646_s2 + $0x10] sm:$0xff] }
   0xd   :  { %v114_v27 = vld [vmem:[%s1645_s1 + $0x118] sm:$0xff]  ;;  %v115_v30 = vld [vmem:[%s1645_s1 + $0x120] sm:$0xff]  ;;  %v100_v33 = vld [vmem:[%s1645_s1 + $0xa8] sm:$0xff] }
   0xe   :  { %v530_v31 = vld [vmem:[%s1646_s2 + $0x18] sm:$0xff]  ;;  %v132_v34 = vld [vmem:[%s1645_s1 + $0x1a8] sm:$0xff]  ;;  %v527_v37 = vld [vmem:[%s1646_s2] sm:$0xff] }
   0xf   :  { %736 = vmatpush.msra.mxu0 %v530_v31  ;;  %1079 = vmatpush.msra.mxu1 %v530_v31  ;;  %v116_v35 = vld [vmem:[%s1645_s1 + $0x128] sm:$0xff]  ;;  %v101_v38 = vld [vmem:[%s1645_s1 + $0xb0] sm:$0xff]  ;;  %v102_v42 = vld [vmem:[%s1645_s1 + $0xb8] sm:$0xff] }
  0x10   :  { %1080 = vmatpush.msra.mxu2 %v530_v31  ;;  %1081 = vmatpush.msra.mxu3 %v530_v31  ;;  %v528_v36 = vld [vmem:[%s1646_s2 + $0x8] sm:$0xff]  ;;  %v133_v39 = vld [vmem:[%s1645_s1 + $0x1b0] sm:$0xff]  ;;  %v134_v43 = vld [vmem:[%s1645_s1 + $0x1b8] sm:$0xff] }
  0x11   :  { %737 = vmatpush.msra.mxu0 %v529_v32  ;;  %1082 = vmatpush.msra.mxu1 %v529_v32  ;;  %v117_v40 = vld [vmem:[%s1645_s1 + $0x130] sm:$0xff]  ;;  %v118_v44 = vld [vmem:[%s1645_s1 + $0x138] sm:$0xff]  ;;  %v103_v46 = vld [vmem:[%s1645_s1 + $0xc0] sm:$0xff] }
  0x12   :  { %185 = vperm.xlu2 %1097, %v87_v7   ;;  %1083 = vmatpush.msra.mxu2 %v529_v32  ;;  %v135_v47 = vld [vmem:[%s1645_s1 + $0x1c0] sm:$0xff]  ;;  %v104_v50 = vld [vmem:[%s1645_s1 + $0xc8] sm:$0xff]  ;;  %v105_v58 = vld [vmem:[%s1645_s1 + $0xd0] sm:$0xff] }
  0x13   :  { %180 = vperm.xlu1 %1096, %v86_v8   ;;  %175 = vperm.xlu0 %1095, %v85_v9   ;;  %v119_v48 = vld [vmem:[%s1645_s1 + $0x140] sm:$0xff]  ;;  %v136_v51 = vld [vmem:[%s1645_s1 + $0x1c8] sm:$0xff]  ;;  %v137_v59 = vld [vmem:[%s1645_s1 + $0x1d0] sm:$0xff] }
  0x14   :  { %1084 = vmatpush.msra.mxu3 %v529_v32  ;;  %738 = vmatpush.msra.mxu0 %v528_v36  ;;  %v120_v52 = vld [vmem:[%s1645_s1 + $0x148] sm:$0xff]  ;;  %v15_v53 = vld [vmem:[%s1644_s0] sm:$0xff]  ;;  %v121_v60 = vld [vmem:[%s1645_s1 + $0x150] sm:$0xff] }
  0x15   :  { %1085 = vmatpush.msra.mxu1 %v528_v36  ;;  %1086 = vmatpush.msra.mxu2 %v528_v36  ;;  %v16_v61 = vld [vmem:[%s1644_s0 + $0x8] sm:$0xff]  ;;  %v106_v2 = vld [vmem:[%s1645_s1 + $0xd8] sm:$0xff]  ;;  %v31_v5 = vld [vmem:[%s1644_s0 + $0x80] sm:$0xff] }
  0x16   :  { %1087 = vmatpush.msra.mxu3 %v528_v36  ;;  %739 = vmatpush.msra.mxu0 %v527_v37  ;;  %v138_v3 = vld [vmem:[%s1645_s1 + $0x1d8] sm:$0xff]  ;;  %v17_v6 = vld [vmem:[%s1644_s0 + $0x10] sm:$0xff]  ;;  %v20_v36 = vld [vmem:[%s1644_s0 + $0x28] sm:$0xff] }
  0x17   :  { %1088 = vmatpush.msra.mxu1 %v527_v37  ;;  %1089 = vmatpush.msra.mxu2 %v527_v37  ;;  %v122_v4 = vld [vmem:[%s1645_s1 + $0x158] sm:$0xff]  ;;  %v109_v32 = vld [vmem:[%s1645_s1 + $0xf0] sm:$0xff] }
  0x18   :  { %1090 = vmatpush.msra.mxu3 %v527_v37  ;;  %v63_v37 = vld [vmem:[%s1644_s0 + $0x180] sm:$0xff] }
  0x1a   :  { %200 = vperm.xlu2 %1097, %v90_v10  }
  0x1b   :  { %195 = vperm.xlu1 %1096, %v89_v11   ;;  %190 = vperm.xlu0 %1095, %v88_v12   ;;  %v107_v12 = vld [vmem:[%s1645_s1 + $0xe0] sm:$0xff] }
  0x22   :  { %215 = vperm.xlu2 %1097, %v93_v13   ;;  %v139_v13 = vld [vmem:[%s1645_s1 + $0x1e0] sm:$0xff] }
  0x23   :  { %210 = vperm.xlu1 %1096, %v92_v14   ;;  %205 = vperm.xlu0 %1095, %v91_v15   ;;  %v123_v14 = vld [vmem:[%s1645_s1 + $0x160] sm:$0xff]  ;;  %v32_v15 = vld [vmem:[%s1644_s0 + $0x88] sm:$0xff] }
  0x2a   :  { %225 = vperm.xlu2 %1097, %v95_v16   ;;  %v18_v16 = vld [vmem:[%s1644_s0 + $0x18] sm:$0xff] }
  0x2b   :  { %385 = vperm.xlu1 %1096, %v127_v17   ;;  %305 = vperm.xlu0 %1095, %v111_v18  }
  0x32   :  { %230 = vperm.xlu2 %1097, %v96_v19  }
  0x33   :  { %390 = vperm.xlu1 %1096, %v128_v20   ;;  %310 = vperm.xlu0 %1095, %v112_v21  }
  0x3a   :  { %235 = vperm.xlu2 %1097, %v97_v22   ;;  %v108_v22 = vld [vmem:[%s1645_s1 + $0xe8] sm:$0xff] }
  0x3b   :  { %395 = vperm.xlu1 %1096, %v129_v23   ;;  %315 = vperm.xlu0 %1095, %v113_v24   ;;  %v140_v23 = vld [vmem:[%s1645_s1 + $0x1e8] sm:$0xff] }
  0x3c   :  { %v124_v24 = vld [vmem:[%s1645_s1 + $0x168] sm:$0xff] }
  0x42   :  { %240 = vperm.xlu2 %1097, %v98_v25   ;;  %v33_v25 = vld [vmem:[%s1644_s0 + $0x90] sm:$0xff] }
  0x43   :  { %400 = vperm.xlu1 %1096, %v130_v26   ;;  %320 = vperm.xlu0 %1095, %v114_v27   ;;  %v19_v26 = vld [vmem:[%s1644_s0 + $0x20] sm:$0xff] }
  0x4a   :  { %245 = vperm.xlu2 %1097, %v99_v28  }
  0x4b   :  { %405 = vperm.xlu1 %1096, %v131_v29   ;;  %325 = vperm.xlu0 %1095, %v115_v30  }
  0x52   :  { %250 = vperm.xlu2 %1097, %v100_v33   ;;  %v141_v33 = vld [vmem:[%s1645_s1 + $0x1f0] sm:$0xff] }
  0x53   :  { %410 = vperm.xlu1 %1096, %v132_v34   ;;  %330 = vperm.xlu0 %1095, %v116_v35   ;;  %v125_v34 = vld [vmem:[%s1645_s1 + $0x170] sm:$0xff]  ;;  %v34_v35 = vld [vmem:[%s1644_s0 + $0x98] sm:$0xff] }
  0x5a   :  { %255 = vperm.xlu2 %1097, %v101_v38   ;;  %v47_v38 = vld [vmem:[%s1644_s0 + $0x100] sm:$0xff] }
  0x5b   :  { %415 = vperm.xlu1 %1096, %v133_v39   ;;  %335 = vperm.xlu0 %1095, %v117_v40  }
  0x5c   :  { %v1268_v41 = vpop.permute.xlu2 %165 }
  0x5d   :  { %v467_v31 = vmul.f32 %v1268_v41, %v19_v26  ;;  %v51_v26 = vld [vmem:[%s1644_s0 + $0x120] sm:$0xff] }
  0x62   :  { %260 = vperm.xlu2 %1097, %v102_v42  }
  0x63   :  { %420 = vperm.xlu1 %1096, %v134_v43   ;;  %340 = vperm.xlu0 %1095, %v118_v44  }
  0x64   :  { %v1279_v45 = vpop.permute.xlu2 %170 }
  0x65   :  { %v468_v43 = vmul.f32 %v1279_v45, %v20_v36  ;;  %v126_v45 = vld [vmem:[%s1645_s1 + $0x178] sm:$0xff]  ;;  %v39_v36 = vld [vmem:[%s1644_s0 + $0xc0] sm:$0xff] }
  0x6a   :  { %265 = vperm.xlu2 %1097, %v103_v46  }
  0x6b   :  { %425 = vperm.xlu1 %1096, %v135_v47   ;;  %345 = vperm.xlu0 %1095, %v119_v48   ;;  %v94_v47 = vld [vmem:[%s1645_s1 + $0x78] sm:$0xff] }
  0x6c   :  { %v1290_v49 = vpop.permute.xlu2 %185  ;;  %v142_v48 = vld [vmem:[%s1645_s1 + $0x1f8] sm:$0xff] }
  0x72   :  { %270 = vperm.xlu2 %1097, %v104_v50   ;;  %v35_v50 = vld [vmem:[%s1644_s0 + $0xa0] sm:$0xff] }
  0x73   :  { %430 = vperm.xlu1 %1096, %v136_v51   ;;  %350 = vperm.xlu0 %1095, %v120_v52   ;;  %v21_v51 = vld [vmem:[%s1644_s0 + $0x30] sm:$0xff]  ;;  %v64_v52 = vld [vmem:[%s1644_s0 + $0x188] sm:$0xff] }
  0x74   :  { %v1304_v54 = vpop.permute.xlu2 %200 }
  0x75   :  { %v156_v55 = vpop.permute.xlu1 %155  ;;  %v146_v56 = vpop.permute.xlu0 %145 }
  0x76   :  { %v463_v57 = vmul.f32 %v146_v56, %v15_v53  ;;  %v465_v11 = vmul.f32 %v156_v55, %v17_v6  ;;  %v48_v53 = vld [vmem:[%s1644_s0 + $0x108] sm:$0xff] }
  0x78   :  { %1015 = vmatmul.msk.f32.vlgmr.msra.gmra.mxu0 %vm531_vm0, %v463_v57 }
  0x7a   :  { %275 = vperm.xlu2 %1097, %v105_v58  }
  0x7b   :  { %435 = vperm.xlu1 %1096, %v137_v59   ;;  %355 = vperm.xlu0 %1095, %v121_v60  }
  0x7c   :  { %v1319_v62 = vpop.permute.xlu2 %215 }
  0x7d   :  { %v161_v63 = vpop.permute.xlu1 %160  ;;  %v151_v0 = vpop.permute.xlu0 %150 }
  0x7e   :  { %v464_v1 = vmul.f32 %v151_v0, %v16_v61  ;;  %v466_v21 = vmul.f32 %v161_v63, %v18_v16  ;;  %v110_v63 = vld [vmem:[%s1645_s1 + $0xf8] sm:$0xff]  ;;  %v36_v0 = vld [vmem:[%s1644_s0 + $0xa8] sm:$0xff] }
  0x80   :  { %1016 = vmatmul.msk.f32.gmra.mxu0 %vm531_vm0, %v464_v1  ;;  %v22_v1 = vld [vmem:[%s1644_s0 + $0x38] sm:$0xff] }
  0x82   :  { %280 = vperm.xlu2 %1097, %v106_v2   ;;  %v65_v2 = vld [vmem:[%s1644_s0 + $0x190] sm:$0xff] }
  0x83   :  { %440 = vperm.xlu1 %1096, %v138_v3   ;;  %360 = vperm.xlu0 %1095, %v122_v4   ;;  %v49_v3 = vld [vmem:[%s1644_s0 + $0x110] sm:$0xff] }
  0x84   :  { %v226_v7 = vpop.permute.xlu2 %225 }
  0x85   :  { %v479_v8 = vmul.f32 %v226_v7, %v31_v5  ;;  %v1337_v9 = vpop.permute.xlu1 %180  ;;  %v1339_v10 = vpop.permute.xlu0 %175 }
  0x86   :  { %v469_v59 = vmul.f32 %v1339_v10, %v21_v51 }
  0x87   :  { %1031 = vmatmul.msk.f32.vlgmr.msra.gmra.mxu1 %vm531_vm0, %v479_v8  ;;  %v470_v8 = vmul.f32 %v1337_v9, %v22_v1  ;;  %v66_v9 = vld [vmem:[%s1644_s0 + $0x198] sm:$0xff] }
  0x88   :  { %1017 = vmatmul.msk.f32.gmra.mxu0 %vm531_vm0, %v465_v11 }
  0x8a   :  { %285 = vperm.xlu2 %1097, %v107_v12   ;;  %v37_v12 = vld [vmem:[%s1644_s0 + $0xb0] sm:$0xff] }
  0x8b   :  { %445 = vperm.xlu1 %1096, %v139_v13   ;;  %365 = vperm.xlu0 %1095, %v123_v14   ;;  %v23_v13 = vld [vmem:[%s1644_s0 + $0x40] sm:$0xff]  ;;  %v50_v14 = vld [vmem:[%s1644_s0 + $0x118] sm:$0xff] }
  0x8c   :  { %v231_v17 = vpop.permute.xlu2 %230 }
  0x8d   :  { %v480_v18 = vmul.f32 %v231_v17, %v32_v15  ;;  %v1358_v19 = vpop.permute.xlu1 %195  ;;  %v1360_v20 = vpop.permute.xlu0 %190 }
  0x8f   :  { %1032 = vmatmul.msk.f32.gmra.mxu1 %vm531_vm0, %v480_v18 }
  0x90   :  { %1018 = vmatmul.msk.f32.gmra.mxu0 %vm531_vm0, %v466_v21  ;;  %v471_v21 = vmul.f32 %v1290_v49, %v23_v13  ;;  %v67_v49 = vld [vmem:[%s1644_s0 + $0x1a0] sm:$0xff] }
  0x92   :  { %290 = vperm.xlu2 %1097, %v108_v22  }
  0x93   :  { %450 = vperm.xlu1 %1096, %v140_v23   ;;  %370 = vperm.xlu0 %1095, %v124_v24   ;;  %v38_v24 = vld [vmem:[%s1644_s0 + $0xb8] sm:$0xff] }
  0x94   :  { %v236_v27 = vpop.permute.xlu2 %235 }
  0x95   :  { %v481_v28 = vmul.f32 %v236_v27, %v33_v25  ;;  %v1379_v29 = vpop.permute.xlu1 %210  ;;  %v1381_v30 = vpop.permute.xlu0 %205  ;;  %v24_v25 = vld [vmem:[%s1644_s0 + $0x48] sm:$0xff] }
  0x97   :  { %1033 = vmatmul.msk.f32.gmra.mxu1 %vm531_vm0, %v481_v28 }
  0x98   :  { %1019 = vmatmul.msk.f32.gmra.mxu0 %vm531_vm0, %v467_v31 }
  0x9a   :  { %295 = vperm.xlu2 %1097, %v109_v32  }
  0x9b   :  { %455 = vperm.xlu1 %1096, %v141_v33   ;;  %375 = vperm.xlu0 %1095, %v125_v34   ;;  %v472_v33 = vmul.f32 %v1360_v20, %v24_v25  ;;  %v68_v20 = vld [vmem:[%s1644_s0 + $0x1a8] sm:$0xff] }
  0x9c   :  { %v241_v39 = vpop.permute.xlu2 %240 }
  0x9d   :  { %v482_v40 = vmul.f32 %v241_v39, %v34_v35  ;;  %v386_v41 = vpop.permute.xlu1 %385  ;;  %v306_v42 = vpop.permute.xlu0 %305 }
  0x9e   :  { %v511_v44 = vmul.f32 %v386_v41, %v63_v37  ;;  %v495_v46 = vmul.f32 %v306_v42, %v47_v38  ;;  %v25_v37 = vld [vmem:[%s1644_s0 + $0x50] sm:$0xff]  ;;  %v52_v38 = vld [vmem:[%s1644_s0 + $0x128] sm:$0xff] }
  0x9f   :  { %1034 = vmatmul.msk.f32.gmra.mxu1 %vm531_vm0, %v482_v40 }
  0xa0   :  { %1020 = vmatmul.msk.f32.gmra.mxu0 %vm531_vm0, %v468_v43  ;;  %1047 = vmatmul.msk.f32.vlgmr.msra.gmra.mxu2 %vm531_vm0, %v495_v46  ;;  %v473_v43 = vmul.f32 %v1358_v19, %v25_v37  ;;  %v69_v19 = vld [vmem:[%s1644_s0 + $0x1b0] sm:$0xff]  ;;  %v74_v37 = vld [vmem:[%s1644_s0 + $0x1d8] sm:$0xff] }
  0xa1   :  { %1063 = vmatmul.msk.f32.vlgmr.msra.gmra.mxu3 %vm531_vm0, %v511_v44 }
  0xa2   :  { %220 = vperm.xlu2 %1097, %v94_v47   ;;  %v40_v47 = vld [vmem:[%s1644_s0 + $0xc8] sm:$0xff] }
  0xa3   :  { %460 = vperm.xlu1 %1096, %v142_v48   ;;  %380 = vperm.xlu0 %1095, %v126_v45   ;;  %v26_v48 = vld [vmem:[%s1644_s0 + $0x58] sm:$0xff]  ;;  %v53_v45 = vld [vmem:[%s1644_s0 + $0x130] sm:$0xff] }
  0xa4   :  { %v246_v55 = vpop.permute.xlu2 %245 }
  0xa5   :  { %v483_v56 = vmul.f32 %v246_v55, %v35_v50  ;;  %v391_v57 = vpop.permute.xlu1 %390  ;;  %v311_v58 = vpop.permute.xlu0 %310  ;;  %v474_v55 = vmul.f32 %v1304_v54, %v26_v48  ;;  %v70_v54 = vld [vmem:[%s1644_s0 + $0x1b8] sm:$0xff]  ;;  %v59_v48 = vld [vmem:[%s1644_s0 + $0x160] sm:$0xff] }
  0xa6   :  { %v512_v60 = vmul.f32 %v391_v57, %v64_v52  ;;  %v496_v61 = vmul.f32 %v311_v58, %v48_v53  ;;  %v41_v58 = vld [vmem:[%s1644_s0 + $0xd0] sm:$0xff] }
  0xa7   :  { %1035 = vmatmul.msk.f32.gmra.mxu1 %vm531_vm0, %v483_v56 }
  0xa8   :  { %1021 = vmatmul.msk.f32.gmra.mxu0 %vm531_vm0, %v469_v59  ;;  %1048 = vmatmul.msk.f32.gmra.mxu2 %vm531_vm0, %v496_v61  ;;  %v27_v59 = vld [vmem:[%s1644_s0 + $0x60] sm:$0xff] }
  0xa9   :  { %1064 = vmatmul.msk.f32.gmra.mxu3 %vm531_vm0, %v512_v60  ;;  %v54_v60 = vld [vmem:[%s1644_s0 + $0x138] sm:$0xff] }
  0xab   :  { %300 = vperm.xlu0 %1095, %v110_v63  }
  0xac   :  { %v251_v4 = vpop.permute.xlu2 %250 }
  0xad   :  { %v484_v5 = vmul.f32 %v251_v4, %v36_v0  ;;  %v396_v6 = vpop.permute.xlu1 %395  ;;  %v316_v7 = vpop.permute.xlu0 %315 }
  0xae   :  { %v513_v10 = vmul.f32 %v396_v6, %v65_v2  ;;  %v497_v11 = vmul.f32 %v316_v7, %v49_v3  ;;  %v475_v2 = vmul.f32 %v1381_v30, %v27_v59  ;;  %v28_v6 = vld [vmem:[%s1644_s0 + $0x68] sm:$0xff]  ;;  %v71_v30 = vld [vmem:[%s1644_s0 + $0x1c0] sm:$0xff] }
  0xaf   :  { %1036 = vmatmul.msk.f32.gmra.mxu1 %vm531_vm0, %v484_v5  ;;  %v42_v5 = vld [vmem:[%s1644_s0 + $0xd8] sm:$0xff]  ;;  %v55_v7 = vld [vmem:[%s1644_s0 + $0x140] sm:$0xff]  ;;  %v476_v13 = vmul.f32 %v1379_v29, %v28_v6  ;;  %v72_v29 = vld [vmem:[%s1644_s0 + $0x1c8] sm:$0xff] }
  0xb0   :  { %1022 = vmatmul.msk.f32.gmra.mxu0 %vm531_vm0, %v470_v8  ;;  %1049 = vmatmul.msk.f32.gmra.mxu2 %vm531_vm0, %v497_v11 }
  0xb1   :  { %1065 = vmatmul.msk.f32.gmra.mxu3 %vm531_vm0, %v513_v10 }
  0xb4   :  { %v256_v15 = vpop.permute.xlu2 %255 }
  0xb5   :  { %v485_v16 = vmul.f32 %v256_v15, %v37_v12  ;;  %v401_v17 = vpop.permute.xlu1 %400  ;;  %v321_v18 = vpop.permute.xlu0 %320  ;;  %v43_v15 = vld [vmem:[%s1644_s0 + $0xe0] sm:$0xff] }
  0xb6   :  { %v514_v22 = vmul.f32 %v401_v17, %v66_v9  ;;  %v498_v23 = vmul.f32 %v321_v18, %v50_v14  ;;  %v56_v17 = vld [vmem:[%s1644_s0 + $0x148] sm:$0xff] }
  0xb7   :  { %1037 = vmatmul.msk.f32.gmra.mxu1 %vm531_vm0, %v485_v16  ;;  %v29_v16 = vld [vmem:[%s1644_s0 + $0x70] sm:$0xff] }
  0xb8   :  { %1023 = vmatmul.msk.f32.gmra.mxu0 %vm531_vm0, %v471_v21  ;;  %1050 = vmatmul.msk.f32.gmra.mxu2 %vm531_vm0, %v498_v23 }
  0xb9   :  { %1066 = vmatmul.msk.f32.gmra.mxu3 %vm531_vm0, %v514_v22 }
  0xbc   :  { %v261_v27 = vpop.permute.xlu2 %260 }
  0xbd   :  { %v486_v28 = vmul.f32 %v261_v27, %v38_v24  ;;  %v406_v31 = vpop.permute.xlu1 %405  ;;  %v326_v32 = vpop.permute.xlu0 %325  ;;  %v477_v24 = vmul.f32 %v1319_v62, %v29_v16  ;;  %v73_v27 = vld [vmem:[%s1644_s0 + $0x1d0] sm:$0xff] }
  0xbe   :  { %v515_v34 = vmul.f32 %v406_v31, %v67_v49  ;;  %v499_v35 = vmul.f32 %v326_v32, %v51_v26  ;;  %v44_v26 = vld [vmem:[%s1644_s0 + $0xe8] sm:$0xff]  ;;  %v57_v62 = vld [vmem:[%s1644_s0 + $0x150] sm:$0xff] }
  0xbf   :  { %1038 = vmatmul.msk.f32.gmra.mxu1 %vm531_vm0, %v486_v28 }
  0xc0   :  { %1024 = vmatmul.msk.f32.gmra.mxu0 %vm531_vm0, %v472_v33  ;;  %1051 = vmatmul.msk.f32.gmra.mxu2 %vm531_vm0, %v499_v35 }
  0xc1   :  { %1067 = vmatmul.msk.f32.gmra.mxu3 %vm531_vm0, %v515_v34 }
  0xc4   :  { %v266_v39 = vpop.permute.xlu2 %265 }
  0xc5   :  { %v487_v40 = vmul.f32 %v266_v39, %v39_v36  ;;  %v411_v41 = vpop.permute.xlu1 %410  ;;  %v331_v42 = vpop.permute.xlu0 %330  ;;  %v45_v36 = vld [vmem:[%s1644_s0 + $0xf0] sm:$0xff] }
  0xc6   :  { %v516_v44 = vmul.f32 %v411_v41, %v68_v20  ;;  %v500_v46 = vmul.f32 %v331_v42, %v52_v38  ;;  %v58_v20 = vld [vmem:[%s1644_s0 + $0x158] sm:$0xff] }
  0xc7   :  { %1039 = vmatmul.msk.f32.gmra.mxu1 %vm531_vm0, %v487_v40 }
  0xc8   :  { %1025 = vmatmul.msk.f32.gmra.mxu0 %vm531_vm0, %v473_v43  ;;  %1052 = vmatmul.msk.f32.gmra.mxu2 %vm531_vm0, %v500_v46  ;;  %v30_v46 = vld [vmem:[%s1644_s0 + $0x78] sm:$0xff] }
  0xc9   :  { %1068 = vmatmul.msk.f32.gmra.mxu3 %vm531_vm0, %v516_v44 }
  0xcc   :  { %v271_v50 = vpop.permute.xlu2 %270 }
  0xcd   :  { %v488_v51 = vmul.f32 %v271_v50, %v40_v47  ;;  %v416_v52 = vpop.permute.xlu1 %415  ;;  %v336_v53 = vpop.permute.xlu0 %335  ;;  %v75_v47 = vld [vmem:[%s1644_s0 + $0x1e0] sm:$0xff] }
  0xce   :  { %v517_v56 = vmul.f32 %v416_v52, %v69_v19  ;;  %v501_v57 = vmul.f32 %v336_v53, %v53_v45 }
  0xcf   :  { %1040 = vmatmul.msk.f32.gmra.mxu1 %vm531_vm0, %v488_v51 }
  0xd0   :  { %1026 = vmatmul.msk.f32.gmra.mxu0 %vm531_vm0, %v474_v55  ;;  %1053 = vmatmul.msk.f32.gmra.mxu2 %vm531_vm0, %v501_v57  ;;  %v60_v57 = vld [vmem:[%s1644_s0 + $0x168] sm:$0xff] }
  0xd1   :  { %1069 = vmatmul.msk.f32.gmra.mxu3 %vm531_vm0, %v517_v56  ;;  %v76_v56 = vld [vmem:[%s1644_s0 + $0x1e8] sm:$0xff] }
  0xd4   :  { %v276_v61 = vpop.permute.xlu2 %275 }
  0xd5   :  { %v489_v63 = vmul.f32 %v276_v61, %v41_v58  ;;  %v421_v0 = vpop.permute.xlu1 %420  ;;  %v341_v1 = vpop.permute.xlu0 %340 }
  0xd6   :  { %v518_v3 = vmul.f32 %v421_v0, %v70_v54  ;;  %v502_v4 = vmul.f32 %v341_v1, %v54_v60  ;;  %v77_v0 = vld [vmem:[%s1644_s0 + $0x1f0] sm:$0xff] }
  0xd7   :  { %1041 = vmatmul.msk.f32.gmra.mxu1 %vm531_vm0, %v489_v63  ;;  %v61_v1 = vld [vmem:[%s1644_s0 + $0x170] sm:$0xff] }
  0xd8   :  { %1027 = vmatmul.msk.f32.gmra.mxu0 %vm531_vm0, %v475_v2  ;;  %1054 = vmatmul.msk.f32.gmra.mxu2 %vm531_vm0, %v502_v4 }
  0xd9   :  { %1070 = vmatmul.msk.f32.gmra.mxu3 %vm531_vm0, %v518_v3 }
  0xdc   :  { %v281_v8 = vpop.permute.xlu2 %280 }
  0xdd   :  { %v490_v10 = vmul.f32 %v281_v8, %v42_v5  ;;  %v426_v11 = vpop.permute.xlu1 %425  ;;  %v346_v12 = vpop.permute.xlu0 %345  ;;  %v62_v8 = vld [vmem:[%s1644_s0 + $0x178] sm:$0xff] }
  0xde   :  { %v519_v9 = vmul.f32 %v426_v11, %v71_v30  ;;  %v503_v14 = vmul.f32 %v346_v12, %v55_v7  ;;  %v78_v7 = vld [vmem:[%s1644_s0 + $0x1f8] sm:$0xff] }
  0xdf   :  { %1042 = vmatmul.msk.f32.gmra.mxu1 %vm531_vm0, %v490_v10 }
  0xe0   :  { %1028 = vmatmul.msk.f32.gmra.mxu0 %vm531_vm0, %v476_v13  ;;  %1055 = vmatmul.msk.f32.gmra.mxu2 %vm531_vm0, %v503_v14 }
  0xe1   :  { %1071 = vmatmul.msk.f32.gmra.mxu3 %vm531_vm0, %v519_v9 }
  0xe4   :  { %v286_v18 = vpop.permute.xlu2 %285 }
  0xe5   :  { %v491_v21 = vmul.f32 %v286_v18, %v43_v15  ;;  %v431_v22 = vpop.permute.xlu1 %430  ;;  %v351_v23 = vpop.permute.xlu0 %350  ;;  %v46_v15 = vld [vmem:[%s1644_s0 + $0xf8] sm:$0xff]  ;;  %s1125_s0 = smov [#allocation2]  }
  0xe6   :  { %v520_v25 = vmul.f32 %v431_v22, %v72_v29  ;;  %v504_v49 = vmul.f32 %v351_v23, %v56_v17  ;;  %s1001_s22 = sshll.u32 %s1125_s0, 4  ;;  %s1002_s22 = int_to_ptr.vmem [resolvable:$true] %s1001_s22 }
  0xe7   :  { %1043 = vmatmul.msk.f32.gmra.mxu1 %vm531_vm0, %v491_v21 }
  0xe8   :  { %1029 = vmatmul.msk.f32.gmra.mxu0 %vm531_vm0, %v477_v24  ;;  %1056 = vmatmul.msk.f32.gmra.mxu2 %vm531_vm0, %v504_v49 }
  0xe9   :  { %1072 = vmatmul.msk.f32.gmra.mxu3 %vm531_vm0, %v520_v25 }
  0xec   :  { %v291_v28 = vpop.permute.xlu2 %290 }
  0xed   :  { %v492_v31 = vmul.f32 %v291_v28, %v44_v26  ;;  %v436_v32 = vpop.permute.xlu1 %435  ;;  %v356_v33 = vpop.permute.xlu0 %355 }
  0xee   :  { %v521_v34 = vmul.f32 %v436_v32, %v73_v27  ;;  %v505_v35 = vmul.f32 %v356_v33, %v57_v62 }
  0xef   :  { %1044 = vmatmul.msk.f32.gmra.mxu1 %vm531_vm0, %v492_v31 }
  0xf0   :  { %1057 = vmatmul.msk.f32.gmra.mxu2 %vm531_vm0, %v505_v35 }
  0xf1   :  { %1073 = vmatmul.msk.f32.gmra.mxu3 %vm531_vm0, %v521_v34 }
  0xf4   :  { %v296_v38 = vpop.permute.xlu2 %295 }
  0xf5   :  { %v493_v39 = vmul.f32 %v296_v38, %v45_v36  ;;  %v441_v40 = vpop.permute.xlu1 %440  ;;  %v361_v41 = vpop.permute.xlu0 %360 }
  0xf6   :  { %v522_v42 = vmul.f32 %v441_v40, %v74_v37  ;;  %v506_v43 = vmul.f32 %v361_v41, %v58_v20  ;;  %v741_v44 = vpop.f32.mrf.mxu0 }
  0xf7   :  { %933 = vst [vmem:[#allocation2] sm:$0xff] %v741_v44  ;;  %1045 = vmatmul.msk.f32.gmra.mxu1 %vm531_vm0, %v493_v39 }
  0xf8   :  { %1058 = vmatmul.msk.f32.gmra.mxu2 %vm531_vm0, %v506_v43 }
  0xf9   :  { %1074 = vmatmul.msk.f32.gmra.mxu3 %vm531_vm0, %v522_v42 }
  0xfc   :  { %v221_v19 = vpop.permute.xlu2 %220 }
  0xfd   :  { %v478_v45 = vmul.f32 %v221_v19, %v30_v46  ;;  %v446_v50 = vpop.permute.xlu1 %445  ;;  %v366_v51 = vpop.permute.xlu0 %365 }
  0xfe   :  { %v523_v52 = vmul.f32 %v446_v50, %v75_v47  ;;  %v507_v53 = vmul.f32 %v366_v51, %v59_v48  ;;  %v744_v55 = vpop.f32.mrf.mxu0 }
  0xff   :  { %934 = vst [vmem:[#allocation2 + $0x8] sm:$0xff] %v744_v55  ;;  %1030 = vmatmul.msk.f32.gmra.mxu0 %vm531_vm0, %v478_v45 }
 0x100   :  { %1059 = vmatmul.msk.f32.gmra.mxu2 %vm531_vm0, %v507_v53 }
 0x101   :  { %1075 = vmatmul.msk.f32.gmra.mxu3 %vm531_vm0, %v523_v52 }
 0x104   :  { %v789_v58 = vpop.f32.mrf.mxu1 }
 0x105   :  { %v451_v59 = vpop.permute.xlu1 %450  ;;  %v371_v54 = vpop.permute.xlu0 %370  ;;  %949 = vst [vmem:[#allocation2 + $0x80] sm:$0xff] %v789_v58 }
 0x106   :  { %v524_v60 = vmul.f32 %v451_v59, %v76_v56  ;;  %v508_v61 = vmul.f32 %v371_v54, %v60_v57  ;;  %v747_v63 = vpop.f32.mrf.mxu0 }
 0x107   :  { %935 = vst [vmem:[#allocation2 + $0x10] sm:$0xff] %v747_v63 }
 0x108   :  { %1060 = vmatmul.msk.f32.gmra.mxu2 %vm531_vm0, %v508_v61 }
 0x109   :  { %1076 = vmatmul.msk.f32.gmra.mxu3 %vm531_vm0, %v524_v60 }
 0x10c   :  { %v792_v2 = vpop.f32.mrf.mxu1 }
 0x10d   :  { %v456_v3 = vpop.permute.xlu1 %455  ;;  %v376_v4 = vpop.permute.xlu0 %375  ;;  %950 = vst [vmem:[#allocation2 + $0x88] sm:$0xff] %v792_v2 }
 0x10e   :  { %v525_v5 = vmul.f32 %v456_v3, %v77_v0  ;;  %v509_v6 = vmul.f32 %v376_v4, %v61_v1  ;;  %v750_v30 = vpop.f32.mrf.mxu0 }
 0x10f   :  { %936 = vst [vmem:[#allocation2 + $0x18] sm:$0xff] %v750_v30 }
 0x110   :  { %1061 = vmatmul.msk.f32.gmra.mxu2 %vm531_vm0, %v509_v6 }
 0x111   :  { %1077 = vmatmul.msk.f32.gmra.mxu3 %vm531_vm0, %v525_v5 }
 0x114   :  { %v795_v10 = vpop.f32.mrf.mxu1 }
 0x115   :  { %v461_v11 = vpop.permute.xlu1 %460  ;;  %v381_v12 = vpop.permute.xlu0 %380  ;;  %951 = vst [vmem:[#allocation2 + $0x90] sm:$0xff] %v795_v10 }
 0x116   :  { %v526_v13 = vmul.f32 %v461_v11, %v78_v7  ;;  %v510_v9 = vmul.f32 %v381_v12, %v62_v8  ;;  %v753_v14 = vpop.f32.mrf.mxu0 }
 0x117   :  { %937 = vst [vmem:[#allocation2 + $0x20] sm:$0xff] %v753_v14 }
 0x118   :  { %1062 = vmatmul.msk.f32.gmra.mxu2 %vm531_vm0, %v510_v9 }
 0x119   :  { %1078 = vmatmul.msk.f32.gmra.mxu3 %vm531_vm0, %v526_v13 }
 0x11c   :  { %v798_v16 = vpop.f32.mrf.mxu1 }
 0x11d   :  { %v301_v29 = vpop.permute.xlu0 %300  ;;  %952 = vst [vmem:[#allocation2 + $0x98] sm:$0xff] %v798_v16 }
 0x11e   :  { %v494_v17 = vmul.f32 %v301_v29, %v46_v15  ;;  %v756_v18 = vpop.f32.mrf.mxu0 }
 0x11f   :  { %938 = vst [vmem:[#allocation2 + $0x28] sm:$0xff] %v756_v18 }
 0x120   :  { %1046 = vmatmul.msk.f32.gmra.mxu1 %vm531_vm0, %v494_v17 }
 0x123   :  { %v837_v21 = vpop.f32.mrf.mxu2 }
 0x124   :  { %965 = vst [vmem:[#allocation2 + $0x100] sm:$0xff] %v837_v21  ;;  %v885_v22 = vpop.f32.mrf.mxu3  ;;  %v801_v23 = vpop.f32.mrf.mxu1 }
 0x125   :  { %981 = vst [vmem:[#allocation2 + $0x180] sm:$0xff] %v885_v22 }
 0x126   :  { %v759_v24 = vpop.f32.mrf.mxu0  ;;  %953 = vst [vmem:[#allocation2 + $0xa0] sm:$0xff] %v801_v23 }
 0x127   :  { %939 = vst [vmem:[#allocation2 + $0x30] sm:$0xff] %v759_v24 }
 0x12b   :  { %v840_v25 = vpop.f32.mrf.mxu2 }
 0x12c   :  { %966 = vst [vmem:[#allocation2 + $0x108] sm:$0xff] %v840_v25  ;;  %v888_v49 = vpop.f32.mrf.mxu3  ;;  %v804_v26 = vpop.f32.mrf.mxu1 }
 0x12d   :  { %982 = vst [vmem:[#allocation2 + $0x188] sm:$0xff] %v888_v49 }
 0x12e   :  { %v762_v27 = vpop.f32.mrf.mxu0  ;;  %954 = vst [vmem:[#allocation2 + $0xa8] sm:$0xff] %v804_v26 }
 0x12f   :  { %940 = vst [vmem:[#allocation2 + $0x38] sm:$0xff] %v762_v27 }
 0x133   :  { %v843_v62 = vpop.f32.mrf.mxu2 }
 0x134   :  { %967 = vst [vmem:[#allocation2 + $0x110] sm:$0xff] %v843_v62  ;;  %v891_v28 = vpop.f32.mrf.mxu3  ;;  %v807_v31 = vpop.f32.mrf.mxu1 }
 0x135   :  { %983 = vst [vmem:[#allocation2 + $0x190] sm:$0xff] %v891_v28 }
 0x136   :  { %v765_v32 = vpop.f32.mrf.mxu0  ;;  %955 = vst [vmem:[#allocation2 + $0xb0] sm:$0xff] %v807_v31 }
 0x137   :  { %941 = vst [vmem:[#allocation2 + $0x40] sm:$0xff] %v765_v32 }
 0x13b   :  { %v846_v33 = vpop.f32.mrf.mxu2 }
 0x13c   :  { %968 = vst [vmem:[#allocation2 + $0x118] sm:$0xff] %v846_v33  ;;  %v894_v34 = vpop.f32.mrf.mxu3  ;;  %v810_v35 = vpop.f32.mrf.mxu1 }
 0x13d   :  { %984 = vst [vmem:[#allocation2 + $0x198] sm:$0xff] %v894_v34 }
 0x13e   :  { %v768_v36 = vpop.f32.mrf.mxu0  ;;  %956 = vst [vmem:[#allocation2 + $0xb8] sm:$0xff] %v810_v35 }
 0x13f   :  { %942 = vst [vmem:[#allocation2 + $0x48] sm:$0xff] %v768_v36 }
 0x143   :  { %v849_v37 = vpop.f32.mrf.mxu2 }
 0x144   :  { %969 = vst [vmem:[#allocation2 + $0x120] sm:$0xff] %v849_v37  ;;  %v897_v20 = vpop.f32.mrf.mxu3  ;;  %v813_v38 = vpop.f32.mrf.mxu1 }
 0x145   :  { %985 = vst [vmem:[#allocation2 + $0x1a0] sm:$0xff] %v897_v20 }
 0x146   :  { %v771_v39 = vpop.f32.mrf.mxu0  ;;  %957 = vst [vmem:[#allocation2 + $0xc0] sm:$0xff] %v813_v38 }
 0x147   :  { %943 = vst [vmem:[#allocation2 + $0x50] sm:$0xff] %v771_v39 }
 0x14b   :  { %v852_v40 = vpop.f32.mrf.mxu2 }
 0x14c   :  { %970 = vst [vmem:[#allocation2 + $0x128] sm:$0xff] %v852_v40  ;;  %v900_v41 = vpop.f32.mrf.mxu3  ;;  %v816_v42 = vpop.f32.mrf.mxu1 }
 0x14d   :  { %986 = vst [vmem:[#allocation2 + $0x1a8] sm:$0xff] %v900_v41 }
 0x14e   :  { %v774_v43 = vpop.f32.mrf.mxu0  ;;  %958 = vst [vmem:[#allocation2 + $0xc8] sm:$0xff] %v816_v42 }
 0x14f   :  { %944 = vst [vmem:[#allocation2 + $0x58] sm:$0xff] %v774_v43 }
 0x153   :  { %v855_v44 = vpop.f32.mrf.mxu2 }
 0x154   :  { %971 = vst [vmem:[#allocation2 + $0x130] sm:$0xff] %v855_v44  ;;  %v903_v46 = vpop.f32.mrf.mxu3  ;;  %v819_v47 = vpop.f32.mrf.mxu1 }
 0x155   :  { %987 = vst [vmem:[#allocation2 + $0x1b0] sm:$0xff] %v903_v46 }
 0x156   :  { %v777_v48 = vpop.f32.mrf.mxu0  ;;  %959 = vst [vmem:[#allocation2 + $0xd0] sm:$0xff] %v819_v47 }
 0x157   :  { %945 = vst [vmem:[#allocation2 + $0x60] sm:$0xff] %v777_v48 }
 0x15b   :  { %v858_v19 = vpop.f32.mrf.mxu2 }
 0x15c   :  { %972 = vst [vmem:[#allocation2 + $0x138] sm:$0xff] %v858_v19  ;;  %v906_v45 = vpop.f32.mrf.mxu3  ;;  %v822_v50 = vpop.f32.mrf.mxu1 }
 0x15d   :  { %988 = vst [vmem:[#allocation2 + $0x1b8] sm:$0xff] %v906_v45 }
 0x15e   :  { %v780_v51 = vpop.f32.mrf.mxu0  ;;  %960 = vst [vmem:[#allocation2 + $0xd8] sm:$0xff] %v822_v50 }
 0x15f   :  { %946 = vst [vmem:[#allocation2 + $0x68] sm:$0xff] %v780_v51 }
 0x163   :  { %v861_v52 = vpop.f32.mrf.mxu2 }
 0x164   :  { %973 = vst [vmem:[#allocation2 + $0x140] sm:$0xff] %v861_v52  ;;  %v909_v53 = vpop.f32.mrf.mxu3  ;;  %v825_v55 = vpop.f32.mrf.mxu1 }
 0x165   :  { %989 = vst [vmem:[#allocation2 + $0x1c0] sm:$0xff] %v909_v53 }
 0x166   :  { %v783_v56 = vpop.f32.mrf.mxu0  ;;  %961 = vst [vmem:[#allocation2 + $0xe0] sm:$0xff] %v825_v55 }
 0x167   :  { %947 = vst [vmem:[#allocation2 + $0x70] sm:$0xff] %v783_v56 }
 0x16b   :  { %v864_v57 = vpop.f32.mrf.mxu2 }
 0x16c   :  { %974 = vst [vmem:[#allocation2 + $0x148] sm:$0xff] %v864_v57  ;;  %v912_v58 = vpop.f32.mrf.mxu3  ;;  %v828_v59 = vpop.f32.mrf.mxu1 }
 0x16d   :  { %990 = vst [vmem:[#allocation2 + $0x1c8] sm:$0xff] %v912_v58 }
 0x16e   :  { %962 = vst [vmem:[#allocation2 + $0xe8] sm:$0xff] %v828_v59 }
 0x173   :  { %v867_v54 = vpop.f32.mrf.mxu2 }
 0x174   :  { %975 = vst [vmem:[#allocation2 + $0x150] sm:$0xff] %v867_v54  ;;  %v915_v60 = vpop.f32.mrf.mxu3  ;;  %v831_v61 = vpop.f32.mrf.mxu1 }
 0x175   :  { %991 = vst [vmem:[#allocation2 + $0x1d0] sm:$0xff] %v915_v60 }
 0x176   :  { %963 = vst [vmem:[#allocation2 + $0xf0] sm:$0xff] %v831_v61 }
 0x17b   :  { %v870_v63 = vpop.f32.mrf.mxu2 }
 0x17c   :  { %976 = vst [vmem:[#allocation2 + $0x158] sm:$0xff] %v870_v63  ;;  %v918_v0 = vpop.f32.mrf.mxu3  ;;  %v786_v1 = vpop.f32.mrf.mxu0 }
 0x17d   :  { %992 = vst [vmem:[#allocation2 + $0x1d8] sm:$0xff] %v918_v0 }
 0x17e   :  { %948 = vst [vmem:[#allocation2 + $0x78] sm:$0xff] %v786_v1 }
 0x183   :  { %v873_v2 = vpop.f32.mrf.mxu2 }
 0x184   :  { %977 = vst [vmem:[#allocation2 + $0x160] sm:$0xff] %v873_v2  ;;  %v921_v3 = vpop.f32.mrf.mxu3 }
 0x185   :  { %993 = vst [vmem:[#allocation2 + $0x1e0] sm:$0xff] %v921_v3 }
 0x18b   :  { %v876_v4 = vpop.f32.mrf.mxu2 }
 0x18c   :  { %978 = vst [vmem:[#allocation2 + $0x168] sm:$0xff] %v876_v4  ;;  %v924_v5 = vpop.f32.mrf.mxu3 }
 0x18d   :  { %994 = vst [vmem:[#allocation2 + $0x1e8] sm:$0xff] %v924_v5 }
 0x193   :  { %v879_v6 = vpop.f32.mrf.mxu2 }
 0x194   :  { %979 = vst [vmem:[#allocation2 + $0x170] sm:$0xff] %v879_v6  ;;  %v927_v30 = vpop.f32.mrf.mxu3 }
 0x195   :  { %995 = vst [vmem:[#allocation2 + $0x1f0] sm:$0xff] %v927_v30 }
 0x19b   :  { %v882_v7 = vpop.f32.mrf.mxu2 }
 0x19c   :  { %980 = vst [vmem:[#allocation2 + $0x178] sm:$0xff] %v882_v7  ;;  %v930_v8 = vpop.f32.mrf.mxu3 }
 0x19d   :  { %996 = vst [vmem:[#allocation2 + $0x1f8] sm:$0xff] %v930_v8  ;;  %v834_v10 = vpop.f32.mrf.mxu1 }
 0x19e   :  { %964 = vst [vmem:[#allocation2 + $0xf8] sm:$0xff] %v834_v10 }
 0x19f   :  { %1009 = dma.vmem_to_hbm [thread:$0]  %s1002_s22, 8192, %s1004_s25, [#allocation3], %s1126_s26, %s1126_s26, %s1127_s27  }
 0x1a0   :  { %1122 = dma.done.wait [#allocation3], 8192  }
 0x1a1   :  { %1123 = vsyncadd [#allocation3], 4294959104 }
 0x1a2   :  { %1014 = vsyncpa [#allocation3], 1 }

</bundles_post_ra>
